<compile_context>
chip_gen: v6e
topology: v6e:2x2x1
jax: 0.10.0
libtpu: 0.0.40
codegen_flags: <defaults>
</compile_context>

<pallas_src>
import functools

import jax
import jax.numpy as jnp
from jax.experimental import pallas as pl
from jax.experimental.pallas import tpu as pltpu


# ---------------------------------------------------------------------------
# Shared in-kernel helpers (all f32).
# ---------------------------------------------------------------------------
def _hsigmoid(y):
    return jnp.clip(y + 3.0, 0.0, 6.0) * (1.0 / 6.0)


def _gate(sums_col, w_ref, b_ref, hw):
    """(C,1) channel sums -> (C,1) hsigmoid(W @ avg + b)."""
    avg = sums_col * (1.0 / hw)                                     # (C, 1)
    y = jnp.dot(w_ref[...].astype(jnp.float32), avg,
                preferred_element_type=jnp.float32)                 # (C, 1)
    y = y + b_ref[...].astype(jnp.float32)
    return _hsigmoid(y)


# ---------------------------------------------------------------------------
# Fused single-pass kernel: pool + gate + rescale on one (C, HW) slab.
# ---------------------------------------------------------------------------
def _fused_kernel(x_ref, w_ref, b_ref, o_ref):
    # x_ref / o_ref: (1, C, HW);  w_ref: (C, C);  b_ref: (C, 1)
    x = x_ref[0].astype(jnp.float32)                                # (C, HW)
    sums = jnp.sum(x, axis=1, keepdims=True)                        # (C, 1)
    s = _gate(sums, w_ref, b_ref, x.shape[1])                       # (C, 1)
    o_ref[0] = (x * s).astype(o_ref.dtype)


# ---------------------------------------------------------------------------
# Streaming pass 1: per-channel spatial sum + gate in the finalize branch.
# ---------------------------------------------------------------------------
def _pool_gate_kernel(x_ref, w_ref, b_ref, s_ref, *, hw, tile, ragged):
    # x_ref: (1, C, tile);  w_ref: (C, C);  b_ref: (C, 1);  s_ref: (1, C, 1) f32
    t = pl.program_id(1)

    @pl.when(t == 0)
    def _():
        s_ref[...] = jnp.zeros_like(s_ref)

    x = x_ref[0].astype(jnp.float32)                                # (C, tile)
    if ragged:
        # Mask the ragged last HW tile (OOB lanes of a partial input block are
        # unspecified and must not pollute the sum). hw/tile are static.
        lane = jax.lax.broadcasted_iota(jnp.int32, x.shape, 1)
        x = jnp.where(lane < (hw - t * tile), x, 0.0)
    s_ref[0] += jnp.sum(x, axis=1, keepdims=True)

    @pl.when(t == pl.num_programs(1) - 1)
    def _():
        s_ref[0] = _gate(s_ref[0], w_ref, b_ref, hw)


# ---------------------------------------------------------------------------
# Streaming pass 2: channel-wise rescale over lane-dense HW tiles.
# ---------------------------------------------------------------------------
def _scale_kernel(x_ref, s_ref, o_ref):
    # x_ref / o_ref: (1, C, tile);  s_ref: (1, C, 1) f32
    # Ragged last tile: OOB input lanes are garbage but the output store is
    # write-masked, so the garbage product is discarded.
    o_ref[0] = (x_ref[0].astype(jnp.float32) * s_ref[0]).astype(o_ref.dtype)


# ---------------------------------------------------------------------------
# Per-generation VMEM budgets.
# ---------------------------------------------------------------------------
def _vmem_budgets():
    cap = 64 * 1024 * 1024  # conservative default (= v7x per-TC VMEM)
    try:
        cap = int(getattr(pltpu.get_tpu_info(), "vmem_capacity_bytes", cap))
    except Exception:
        pass
    vmem_limit = cap * 3 // 4       # what the compiler may schedule
    work_budget = cap * 45 // 100   # what our double-buffered blocks may use
    return vmem_limit, work_budget


# ---------------------------------------------------------------------------
# Dispatch paths.
# ---------------------------------------------------------------------------
def _ese_fused(x_flat, w, b, vmem_limit):
    N, C, HW = x_flat.shape
    return pl.pallas_call(
        _fused_kernel,
        out_shape=jax.ShapeDtypeStruct((N, C, HW), x_flat.dtype),
        grid_spec=pltpu.PrefetchScalarGridSpec(
            num_scalar_prefetch=0,
            grid=(N,),
            in_specs=[
                pl.BlockSpec((1, C, HW), lambda n: (n, 0, 0)),
                pl.BlockSpec((C, C), lambda n: (0, 0)),
                pl.BlockSpec((C, 1), lambda n: (0, 0)),
            ],
            out_specs=pl.BlockSpec((1, C, HW), lambda n: (n, 0, 0)),
        ),
        compiler_params=pltpu.CompilerParams(
            dimension_semantics=("parallel",),
            vmem_limit_bytes=vmem_limit,
        ),
    )(x_flat, w, b)


def _ese_streaming(x_flat, w, b, work_budget, vmem_limit, tile_override=None):
    N, C, HW = x_flat.shape
    itemsize = jnp.dtype(x_flat.dtype).itemsize
    # Per grid step, pass 2 holds 2 double-buffered (C, tile) slabs in the input
    # dtype (in + out) plus ~8 bytes/elem of f32 temporaries.
    per_lane = C * (4 * itemsize + 8)
    max_tile = max(128, (work_budget // per_lane) // 128 * 128)
    if tile_override is not None:
        max_tile = tile_override
    if HW <= max_tile:
        tile, n_t = HW, 1           # full-extent tile: no (8,128) issue, no mask
    else:
        tile, n_t = max_tile, pl.cdiv(HW, max_tile)
    ragged = (HW % tile) != 0

    pool_kernel = functools.partial(
        _pool_gate_kernel, hw=HW, tile=tile, ragged=ragged)

    # ---- Pass 1: spatial sums + gate (weight/bias resident) -----------------
    s = pl.pallas_call(
        pool_kernel,
        out_shape=jax.ShapeDtypeStruct((N, C, 1), jnp.float32),
        grid_spec=pltpu.PrefetchScalarGridSpec(
            num_scalar_prefetch=0,
            grid=(N, n_t),  # reduction (HW-tile) axis last
            in_specs=[
                pl.BlockSpec((1, C, tile), lambda n, t: (n, 0, t)),
                pl.BlockSpec((C, C), lambda n, t: (0, 0)),
                pl.BlockSpec((C, 1), lambda n, t: (0, 0)),
            ],
            out_specs=pl.BlockSpec((1, C, 1), lambda n, t: (n, 0, 0)),
        ),
        compiler_params=pltpu.CompilerParams(
            dimension_semantics=("parallel", "arbitrary"),
            vmem_limit_bytes=vmem_limit,
        ),
    )(x_flat, w, b)

    # ---- Pass 2: streaming rescale ------------------------------------------
    out_flat = pl.pallas_call(
        _scale_kernel,
        out_shape=jax.ShapeDtypeStruct((N, C, HW), x_flat.dtype),
        grid_spec=pltpu.PrefetchScalarGridSpec(
            num_scalar_prefetch=0,
            grid=(N, n_t),
            in_specs=[
                pl.BlockSpec((1, C, tile), lambda n, t: (n, 0, t)),
                pl.BlockSpec((1, C, 1), lambda n, t: (n, 0, 0)),
            ],
            out_specs=pl.BlockSpec((1, C, tile), lambda n, t: (n, 0, t)),
        ),
        compiler_params=pltpu.CompilerParams(
            dimension_semantics=("parallel", "parallel"),
            vmem_limit_bytes=vmem_limit,
        ),
    )(x_flat, s)
    return out_flat


def ese_module(x_nchw, weight, bias):
    """eSE forward. x_nchw: (N,C,H,W); weight: (C,C) or (C,C,1,1); bias: (C,)."""
    N, C, H, W = x_nchw.shape
    HW = H * W
    x_flat = x_nchw.reshape(N, C, HW)
    w = weight.reshape(C, C)
    b = bias.reshape(C, 1)

    vmem_limit, work_budget = _vmem_budgets()
    itemsize = jnp.dtype(x_nchw.dtype).itemsize
    # Fused working set per grid step: double-buffered (C, HW) in + out slabs in
    # the input dtype plus ~8 bytes/elem of f32 temporaries, plus weight.
    fused_bytes = C * HW * (4 * itemsize + 8) + 2 * C * C * 4

    if fused_bytes <= work_budget:
        out_flat = _ese_fused(x_flat, w, b, vmem_limit)
    else:
        out_flat = _ese_streaming(x_flat, w, b, work_budget, vmem_limit)
    return out_flat.reshape(N, C, H, W)


def ese_reference(x_nchw, weight, bias):
    """Pure-JAX reference mirroring the PyTorch forward."""
    xf = x_nchw.astype(jnp.float32)
    avg = jnp.mean(xf, axis=(2, 3))                                  # (N, C)
    y = avg @ weight.reshape(weight.shape[0], -1).astype(jnp.float32).T
    y = y + bias.astype(jnp.float32)
    s = jnp.clip(y + 3.0, 0.0, 6.0) / 6.0                            # hsigmoid
    return (xf * s[:, :, None, None]).astype(x_nchw.dtype)


if __name__ == "__main__":
    key = jax.random.PRNGKey(0)
    N, C, H, W = 2, 4, 16, 16

    kx, kw, kb = jax.random.split(key, 3)
    x = jax.random.normal(kx, (N, C, H, W), dtype=jnp.float32)

    # Conv2d(C, C, 1) parameters: weight (C_out, C_in, 1, 1) stored as (C, C).
    bound = 1.0 / float(C) ** 0.5
    weight = jax.random.uniform(kw, (C, C), jnp.float32, -bound, bound)
    bias = jax.random.uniform(kb, (C,), jnp.float32, -bound, bound)

    # Main entry point (fused single-pass kernel at this size).
    ref = ese_reference(x, weight, bias)
    out = jax.block_until_ready(ese_module(x, weight, bias))
    assert out.shape == (N, C, H, W)
    assert jnp.allclose(out, ref, atol=1e-5, rtol=1e-5), "fused path mismatch"

    # Also exercise the two-pass streaming fallback with a forced small tile so
    # the ragged-last-tile masking path is covered (HW = 18*18 = 324 -> 3 tiles
    # of 128, last one partial).
    H2 = W2 = 18
    x2 = jax.random.normal(kx, (N, C, H2, W2), dtype=jnp.float32)
    ref2 = ese_reference(x2, weight, bias)
    vmem_limit, work_budget = _vmem_budgets()
    out2 = _ese_streaming(
        x2.reshape(N, C, H2 * W2), weight.reshape(C, C), bias.reshape(C, 1),
        work_budget, vmem_limit, tile_override=128,
    ).reshape(N, C, H2, W2)
    out2 = jax.block_until_ready(out2)
    assert jnp.allclose(out2, ref2, atol=1e-5, rtol=1e-5), "streaming path mismatch"

    print("KERNEL_OK")
</pallas_src>

<mosaic_0001>
module attributes {stable_mosaic.version = 11 : i64} {
  func.func @_fused_kernel(%arg0: i32, %arg1: memref<1x4x256xf32, #tpu.memory_space<vmem>>, %arg2: memref<4x4xf32, #tpu.memory_space<vmem>>, %arg3: memref<4x1xf32, #tpu.memory_space<vmem>>, %arg4: memref<1x4x256xf32, #tpu.memory_space<vmem>>) attributes {dimension_semantics = [#tpu.dimension_semantics<parallel>], iteration_bounds = array<i64: 2>, scalar_prefetch = 0 : i64, scratch_operands = 0 : i64, tpu.core_type = #tpu.core_type<tc>, window_params = [{transform_indices = @transform_0, window_bounds = array<i64: 1, 4, 256>}, {pipeline_mode = #tpu.pipeline_mode<synchronous>, transform_indices = @transform_1, window_bounds = array<i64: 4, 4>}, {pipeline_mode = #tpu.pipeline_mode<synchronous>, transform_indices = @transform_2, window_bounds = array<i64: 4, 1>}, {transform_indices = @transform_3, window_bounds = array<i64: 1, 4, 256>}]} {
    %c0 = arith.constant 0 : index
    %c0_0 = arith.constant 0 : index
    %c0_1 = arith.constant 0 : index
    %0 = vector.load %arg1[%c0, %c0_0, %c0_1] : memref<1x4x256xf32, #tpu.memory_space<vmem>>, vector<1x4x256xf32>
    %1 = vector.shape_cast %0 : vector<1x4x256xf32> to vector<4x256xf32>
    %cst = arith.constant dense<0.000000e+00> : vector<4xf32>
    %2 = vector.multi_reduction <add>, %1, %cst [1] : vector<4x256xf32> to vector<4xf32>
    %3 = vector.shape_cast %2 : vector<4xf32> to vector<4x1xf32>
    %cst_2 = arith.constant 3.906250e-03 : f32
    %4 = vector.broadcast %cst_2 : f32 to vector<4x1xf32>
    %5 = arith.mulf %3, %4 : vector<4x1xf32>
    %c0_3 = arith.constant 0 : index
    %c0_4 = arith.constant 0 : index
    %6 = vector.load %arg2[%c0_3, %c0_4] : memref<4x4xf32, #tpu.memory_space<vmem>>, vector<4x4xf32>
    %cst_5 = arith.constant dense<0.000000e+00> : vector<4x1xf32>
    %7 = tpu.matmul %6, %5, %cst_5 {dimension_numbers = #tpu.dot_dimension_numbers<[1], [0], [0], [1], [0, 0, 1, 1], [], []>} : vector<4x4xf32>, vector<4x1xf32>, vector<4x1xf32> -> vector<4x1xf32>
    %c0_6 = arith.constant 0 : index
    %c0_7 = arith.constant 0 : index
    %8 = vector.load %arg3[%c0_6, %c0_7] : memref<4x1xf32, #tpu.memory_space<vmem>>, vector<4x1xf32>
    %9 = arith.addf %7, %8 : vector<4x1xf32>
    %cst_8 = arith.constant 3.000000e+00 : f32
    %10 = vector.broadcast %cst_8 : f32 to vector<4x1xf32>
    %11 = arith.addf %9, %10 : vector<4x1xf32>
    %cst_9 = arith.constant 0.000000e+00 : f32
    %cst_10 = arith.constant 6.000000e+00 : f32
    %12 = vector.broadcast %cst_9 : f32 to vector<4x1xf32>
    %13 = arith.maximumf %12, %11 : vector<4x1xf32>
    %14 = vector.broadcast %cst_10 : f32 to vector<4x1xf32>
    %15 = arith.minimumf %14, %13 : vector<4x1xf32>
    %cst_11 = arith.constant 0.166666672 : f32
    %16 = vector.broadcast %cst_11 : f32 to vector<4x1xf32>
    %17 = arith.mulf %15, %16 : vector<4x1xf32>
    %18 = vector.broadcast %17 : vector<4x1xf32> to vector<4x256xf32>
    %19 = arith.mulf %1, %18 : vector<4x256xf32>
    %c0_12 = arith.constant 0 : index
    %c0_13 = arith.constant 0 : index
    %c0_14 = arith.constant 0 : index
    %20 = vector.load %arg4[%c0_12, %c0_13, %c0_14] : memref<1x4x256xf32, #tpu.memory_space<vmem>>, vector<1x4x256xf32>
    %21 = vector.shape_cast %20 : vector<1x4x256xf32> to vector<4x256xf32>
    %22 = vector.shape_cast %19 : vector<4x256xf32> to vector<1x4x256xf32>
    tpu.vector_store %arg4[%c0_12, %c0_13, %c0_14], %22 {strides = array<i32>} : memref<1x4x256xf32, #tpu.memory_space<vmem>>, vector<1x4x256xf32>,
    return
  }
  func.func @transform_0(%arg0: i32) -> (i32, i32, i32) {
    %c0_i32 = arith.constant 0 : i32
    %c0_i32_0 = arith.constant 0 : i32
    %c0_i32_1 = arith.constant 0 : i32
    return %arg0, %c0_i32, %c0_i32_0 : i32, i32, i32
  }
  func.func @transform_1(%arg0: i32) -> (i32, i32) {
    %c0_i32 = arith.constant 0 : i32
    %c0_i32_0 = arith.constant 0 : i32
    %c0_i32_1 = arith.constant 0 : i32
    return %c0_i32, %c0_i32_0 : i32, i32
  }
  func.func @transform_2(%arg0: i32) -> (i32, i32) {
    %c0_i32 = arith.constant 0 : i32
    %c0_i32_0 = arith.constant 0 : i32
    %c0_i32_1 = arith.constant 0 : i32
    return %c0_i32, %c0_i32_0 : i32, i32
  }
  func.func @transform_3(%arg0: i32) -> (i32, i32, i32) {
    %c0_i32 = arith.constant 0 : i32
    %c0_i32_0 = arith.constant 0 : i32
    %c0_i32_1 = arith.constant 0 : i32
    return %arg0, %c0_i32, %c0_i32_0 : i32, i32, i32
  }
}

</mosaic_0001>

<bundles_post_ra>
// kernel: tpu_custom_call.1
= control target key start
LH: loop header
LB: loop body
LE: loop exit
PB: predicated region body
PF: predicated region fallthrough
CT: control target
= control target key end

     0   :  { %8 = vsyncpa [#allocation3], 0  ;;  %s728_s0 = inlined_call_operand.hbm [shape: f32[2,4,256], index: 0, kind: input, shape index: {}]   ;;  %s729_s1 = inlined_call_operand.vmem [shape: f32[4,4], index: 1, kind: input, shape index: {}]   ;;  %s730_s2 = inlined_call_operand.vmem [shape: f32[4,1], index: 2, kind: input, shape index: {}]   ;;  %s731_s3 = inlined_call_operand.hbm [shape: f32[2,4,256], index: 3, kind: output, shape index: {}]  }
   0x1   :  { %10 = vsyncpa [#allocation3 + $0x1], 0 }
   0x2   :  { %11 = vsyncpa [#allocation4], 0 }
   0x3   :  { %13 = vsyncpa [#allocation4 + $0x1], 0  ;;  %s577_s12 = smov 0   ;;  %s579_s13 = smov 0  }
   0x4   :  { %s581_s14 = smov 0   ;;  %s583_s15 = smov 0  }
   0x5 LB: > { %s598_s16 = sadd.s32 4294967295, %s549_s15   ;;  %s380_s17 = sadd.s32 4294967294, %s549_s15   ;;  %s549_s15 = sphi %s583_s15, %s748_s15   ;;  %s545_s14 = sphi %s581_s14, %s747_s14   ;;  %s541_s13 = sphi %s579_s13, %s746_s13   ;;  %s537_s12 = sphi %s577_s12, %s745_s12  }
   0x6   : > { %s602_s18 = sadd.s32 1, %s549_s15   ;;  %s26_s19 = sadd.s32 1, %s545_s14 }
   0x7   : > { %s23_s20 = ssub.s32 %s549_s15, %s602_s18  ;;  %p33_p0 = scmp.ne.s32.totalorder %s545_s14, %s541_s13 }
   0x8   : > { %p24_p1 = scmp.eq.s32.totalorder %s23_s20, 0  ;;  %p34_p2 = scmp.eq.s32.totalorder %s549_s15, 0 }
   0x9   : > { %p39_p3 = scmp.ne.s32.totalorder %s541_s13, %s537_s12  ;;  %p40_p4 = scmp.eq.s32.totalorder %s598_s16, 0 }
   0xa   : > { %s614_s21 = scalar_select %p24_p1, %s545_s14, %s26_s19  }
   0xb   : > { %p616_p5 = por %p34_p2, %p33_p0  ;;  %p620_p6 = por %p40_p4, %p39_p3 }
   0xc   : > { %p105_p7 = scmp.eq.s32.totalorder %s598_s16, 1  ;;  %p111_p8 = scmp.eq.s32.totalorder %s380_s17, 1 }
   0xd   : > { %s735_s23 = scalar_select %p620_p6, 1, 0 }
   0xe   : > { %p417_p10 = scmp.lt.s32.totalorder %s549_s15, 2  ;;  %p627_p11 = por %p105_p7, %p33_p0 }
   0xf   : > { %p631_p12 = por %p111_p8, %p39_p3  ;;  %s137_s26 = sand.u32 1, %s545_s14  }
  0x10   : > { %s736_s24 = scalar_select %p627_p11, 1, 0 }
  0x11   : > { %s737_s25 = scalar_select %p631_p12, 1, 0 }
  0x12   : > { %s396_s27 = sshll.u32 %s549_s15, 7  ;;  %s383_s28 = sshll.u32 %s137_s26, 3 }
  0x13   : > { %s640_s4 = scalar_lea.hbm %s728_s0, %s396_s27  ;;  %s141_s5 = scalar_lea.vmem [#allocation2], %s383_s28 }
  0x14   : > { %s149_s6 = sshll.u32 %s141_s5, 4  ;;  %p644_p13 = pnand %p417_p10, %p616_p5  ;;  %s648_s6 = int_to_ptr.vmem [resolvable:$true] %s149_s6 }
  0x15   : > { %s138_s8 = scalar_lea.sflag [#allocation3], %s137_s26  ;;  %s457_s9 = scalar_lea.hbm %s640_s4, 128 }
  0x16   : > { %p458_p2 = scmp.ne.s32.totalorder %s640_s4, %s457_s9  ;;  %p459_p3 = pneg %p644_p13 }
  0x17   : > { %s462_s17 = scalar_lea.hbm %s728_s0, 256  ;;  %p463_p5 = scmp.lt.s32.totalorder %s640_s4, %s728_s0 }
  0x18   : > { %p460_p4 = pnand %p459_p3, %p458_p2  ;;  %p464_p8 = scmp.lt.s32.totalorder %s462_s17, %s457_s9 }
  0x1a   : > { %p461_p7 = pneg %p460_p4  ;;  %p465_p10 = por %p464_p8, %p463_p5 }
  0x1c   : > { %p466_p9 = pnand %p465_p10, %p461_p7 }
  0x1e   : > { %469 = shalt.err (!%p466_p9)
}
  0x1f   : > { %s470_s22 = scalar_lea.vmem %s648_s6, 128  ;;  %s551_s26 = smov [#allocation2]  }
  0x20   : > { %p471_p0 = scmp.ne.s32.totalorder %s648_s6, %s470_s22  ;;  %s475_s27 = sshll.u32 %s551_s26, 4  ;;  %s476_s27 = int_to_ptr.vmem [resolvable:$false] %s475_s27 }
  0x21   : > { %s477_s28 = scalar_lea.vmem %s476_s27, 256  ;;  %p478_p4 = scmp.lt.s32.totalorder %s648_s6, %s476_s27 }
  0x22   : > { %p473_p1 = pnand %p471_p0, %p459_p3  ;;  %p479_p12 = scmp.lt.s32.totalorder %s477_s28, %s470_s22 }
  0x24   : > { %p474_p2 = pneg %p473_p1  ;;  %p480_p11 = por %p479_p12, %p478_p4 }
  0x26   : > { %p481_p6 = pnand %p480_p11, %p474_p2 }
  0x28   : > { %484 = shalt.err (!%p481_p6)
}
  0x29   : > { %412 = dma.hbm_to_vmem [thread:$0]  (!%p644_p13), %s640_s4, 128, %s648_s6, %s138_s8  }
  0x2a   : > { %p739_p9 = scmp.lt.s32.totalorder %s549_s15, 3  ;;  %p740_p7 = scmp.ge.s32.totalorder %s549_s15, 1 }
  0x2c   : > { %p155_p0 = pnand %p740_p7, %p739_p9 }
  0x2d   : > { %s675_s29 = sand.u32 (!%p155_p0), 1, %s541_s13   ;;  %p741_p6 = scmp.ne.s32.totalorder (!%p155_p0), %s735_s23, 0 }
  0x2e   : > { %158 = sbr.rel (%p155_p0) target bundleno = 543 (0x21f), region = 32  ;;  %s387_s30 = sshll.u32 (!%p155_p0), %s675_s29, 3 }
  0x2f   : > { %s161_s5 = scalar_lea.sflag (!%p155_p0), [#allocation3], %s675_s29  ;;  %s164_s7 = scalar_lea.vmem (!%p155_p0), [#allocation2], %s387_s30 }
  0x33   : > { %528 = dma.done.wait (%p741_p6), %s161_s5, 128  }
  0x34   : > { %530 = vsyncadd (%p741_p6), %s161_s5, 4294967168  ;;  %vm191_vm0 = vcmask 1043456   ;;  %v187_v0 = vld [vmem:[%s164_s7] sm:$0xff]  ;;  %v552_v5 = vmov 0.0   ;;  %vm553_vm1 = vmmov 0   ;;  %vm200_vm2 = vcmask 31744  }
  0x35   : > { %v189_v1 = vcombine.high %v187_v0, %v187_v0  ;;  %v192_v2 = vsel %vm191_vm0, %v187_v0, 0.0  ;;  %400 = vmatprep.subr.mxu0 %v552_v5  ;;  %402 = vmatprep.mubr.msk.f32.mxu0 %vm553_vm1, %v552_v5  ;;  %v198_v8 = vld [vmem:[%s729_s1] sm:$0xf]  ;;  %v554_v9 = vmov 0   ;;  %v555_v18 = vmov 839922192  }
  0x36   : > { %455 = vset.pattern.permute.xlu0 %v554_v9  ;;  %v199_v10 = vld [vmem:[%s730_s2] sm:$0xf]  ;;  %v286_v19 = vunpack.c.l.s4 %v555_v18  ;;  %v288_v20 = vlaneseq  ;;  %s397_s9 = sshll.u32 %s598_s16, 7  ;;  %s186_s10 = scalar_lea.vmem [#allocation5], %s387_s30 }
  0x37   : > { %v193_v3 = vsel %vm191_vm0, %v189_v1, 0.0  ;;  %s310_s11 = sshll.u32 %s186_s10, 4  ;;  %s308_s20 = scalar_lea.hbm %s731_s3, %s397_s9  ;;  %s311_s11 = int_to_ptr.vmem [resolvable:$true] %s310_s11 }
  0x38   : > { %v194_v4 = vadd.f32 %v193_v3, %v192_v2  ;;  %v287_v21 = vunpack.c.0.s8 %v286_v19  ;;  %v289_v22 = vshrl.u32 %v288_v20, 7  ;;  %s296_s22 = scalar_lea.sflag [#allocation4], %s675_s29  ;;  %s485_s26 = scalar_lea.vmem %s311_s11, 128 }
  0x39   : > { %p486_p11 = scmp.ne.s32.totalorder %s311_s11, %s485_s26  ;;  %p742_p12 = scmp.ne.s32.totalorder %s736_s24, 0 }
  0x3a   : > { %195 = vadd.xlane.f32.xlu0 %v194_v4  ;;  %v290_v23 = vsub.s32 %v287_v21, %v289_v22  ;;  %s556_s27 = smov [#allocation5]  }
  0x3b   : > { %p487_p13 = pnand %p486_p11, %p742_p12  ;;  %s489_s28 = sshll.u32 %s556_s27, 4  ;;  %s490_s28 = int_to_ptr.vmem [resolvable:$false] %s489_s28 }
  0x3c   : > { %s491_s16 = scalar_lea.vmem %s490_s28, 256  ;;  %p492_p3 = scmp.lt.s32.totalorder %s311_s11, %s490_s28 }
  0x3d   : > { %p488_p1 = pneg %p487_p13  ;;  %p493_p5 = scmp.lt.s32.totalorder %s491_s16, %s485_s26 }
  0x3f   : > { %p494_p8 = por %p493_p5, %p492_p3 }
  0x41   : > { %p495_p10 = pnand %p494_p8, %p488_p1 }
  0xc3   : > { %v196_v6 = vpop.xlane.xlu0 %195 }
  0xc4   : > { %v197_v7 = vmul.f32 0.00390625, %v196_v6 }
  0xc6   : > { %401 = vmatpush3.msk.msra.mxu0 %vm191_vm0, %v197_v7 }
  0xc7   : > { %403 = vmatmul.mubr.msk.f32.vlgmr.msra.gmra.mxu0 %vm200_vm2, %v198_v8 }
 0x187   : > { %v273_v11 = vpop.f32.mrf.mxu0 }
 0x188   : > { %v274_v12 = vadd.f32 %v273_v11, %v199_v10 }
 0x189   : > { %v404_v13 = vpop.f32.mrf.mxu0 }
 0x18a   : > { %v277_v14 = vadd.f32 3.0, %v274_v12 }
 0x18c   : > { %v278_v15 = vmax.f32 %v277_v14, 0.0 }
 0x18e   : > { %v279_v16 = vmin.f32 %v278_v15, 6.0 }
 0x190   : > { %v280_v17 = vmul.f32 0.16666667, %v279_v16 }
 0x192   : > { %283 = vperm.xlu0 %455, %v280_v17  }
 0x20d   : > { %v284_v24 = vpop.permute.xlu0 %283 }
 0x20e   : > { %v291_v25 = vrot.slane %v284_v24, %v290_v23 }
 0x210   : > { %v293_v26 = vmul.f32 %v291_v25, %v187_v0 }
 0x212   : > { %294 = vst [vmem:[%s186_s10] sm:$0xff] %v293_v26 }
 0x213   : > { %498 = shalt.err (!%p495_p10)
}
 0x214   : > { %s499_s30 = scalar_lea.hbm %s308_s20, 128  ;;  %s503_s7 = scalar_lea.hbm %s731_s3, 256 }
 0x215   : > { %p500_p2 = scmp.ne.s32.totalorder %s308_s20, %s499_s30  ;;  %p504_p7 = scmp.lt.s32.totalorder %s308_s20, %s731_s3 }
 0x216   : > { %p505_p0 = scmp.lt.s32.totalorder %s503_s7, %s499_s30 }
 0x217   : > { %p501_p4 = pnand %p500_p2, %p742_p12 }
 0x218   : > { %p506_p6 = por %p505_p0, %p504_p7 }
 0x219   : > { %p502_p9 = pneg %p501_p4 }
 0x21b   : > { %p507_p11 = pnand %p506_p6, %p502_p9 }
 0x21d   : > { %510 = shalt.err (!%p507_p11)
}
 0x21e   : > { %407 = dma.vmem_to_hbm [thread:$0]  (%p742_p12), %s311_s11, 128, %s308_s20, %s296_s22  }
 0x21f PF: > { %s322_s23 = sand.u32 1, %s537_s12   ;;  %p743_p13 = scmp.ne.s32.totalorder %s737_s25, 0 }
 0x220   : > { %p744_p1 = scmp.ge.s32.totalorder %s549_s15, 2  ;;  %s323_s8 = scalar_lea.sflag [#allocation4], %s322_s23 }
 0x222   : > { %p414_p3 = pnand %p744_p1, %p743_p13 }
 0x224   : > { %p415_p5 = pneg %p414_p3 }
 0x226   : > { %532 = dma.done.wait (%p415_p5), %s323_s8, 128  }
 0x227   : > { %534 = vsyncadd (%p415_p5), %s323_s8, 4294967168  ;;  %p16_p8 = scmp.ge.s32.totalorder %s602_s18, 4   ;;  %s745_s12 = smov %s541_s13 }
 0x228   : > { %s746_s13 = smov %s545_s14  ;;  %s747_s14 = smov %s614_s21 }
 0x229   : > { %s748_s15 = smov %s602_s18  ;;  %18 = sbr.rel (!%p16_p8) target bundleno = 5 (0x5), region = 77 }
 0x22e   :  { %328 = vsyncpa [#allocation3], 1 }
 0x22f   :  { %330 = vsyncpa [#allocation3 + $0x1], 1 }
 0x230   :  { %331 = vsyncpa [#allocation4], 1 }
 0x231   :  { %333 = vsyncpa [#allocation4 + $0x1], 1 }

</bundles_post_ra>
